<compile_context>
chip_gen: v6e
topology: v6e:2x2x1
jax: 0.10.0
libtpu: 0.0.40
codegen_flags: <defaults>
</compile_context>

<pallas_src>
import math
from functools import partial

import jax
import jax.numpy as jnp
from jax import lax
from jax.experimental import pallas as pl
from jax.experimental.pallas import tpu as pltpu


VMEM_LIMIT = 32 * 1024 * 1024   # re-derived for v7x (64 MiB physical VMEM)


# ----------------------------------------------------------------------------
# small utils
# ----------------------------------------------------------------------------
def _round_up(x, m):
    return ((x + m - 1) // m) * m


def _pair(v):
    return v if isinstance(v, tuple) else (v, v)


def _triple(v):
    return v if isinstance(v, tuple) else (v, v, v)


def _norm_pad(padding, n):
    """Normalize padding to a tuple of n (lo, hi) pairs."""
    if isinstance(padding, int):
        return ((padding, padding),) * n
    padding = tuple(padding)
    if all(isinstance(p, int) for p in padding):
        assert len(padding) == n
        return tuple((p, p) for p in padding)
    assert len(padding) == n
    return tuple((int(p[0]), int(p[1])) for p in padding)


def _pick_tile(n, cap=32):
    """Largest row-tile (power-of-two multiple of 8, <= cap) dividing n."""
    t = cap
    while t >= 8:
        if n % t == 0:
            return t
        t //= 2
    return n


# ----------------------------------------------------------------------------
# Pallas kernel 1: fused matmul (bf16 MXU, f32 acc) + scale/shift + LeakyReLU
# ----------------------------------------------------------------------------
def _mm_kernel(a_ref, b_ref, s_ref, t_ref, o_ref, *, act):
    acc = jnp.dot(a_ref[...], b_ref[...], preferred_element_type=jnp.float32)
    acc = acc * s_ref[...] + t_ref[...]          # per-output-channel scale/shift
    if act == "leaky":
        acc = jnp.where(acc >= 0.0, acc, 0.01 * acc)
    o_ref[...] = acc.astype(o_ref.dtype)


@partial(jax.jit, static_argnames=("act", "out_dtype"))
def fused_matmul(a, b, scale, shift, *, act="none", out_dtype=jnp.bfloat16):
    """(M, K) @ (K, N) in bf16 with f32 accumulation and a fused epilogue.

    K and N are NOT padded (block shape == full extent; Mosaic pads internally),
    avoiding extra HBM passes over the patch matrix and weights.
    """
    M, K = a.shape
    K2, N = b.shape
    assert K == K2
    a = a.astype(jnp.bfloat16)
    b = b.astype(jnp.bfloat16)

    Mp = _round_up(M, 8)
    if Mp > 256:
        TM = 256                                  # >=2 parallel steps for M>=512
        Mp = _round_up(M, TM)
    else:
        TM = Mp
    a_p = a if Mp == M else jnp.pad(a, ((0, Mp - M), (0, 0)))
    s_2d = scale.astype(jnp.float32).reshape(1, N)
    t_2d = shift.astype(jnp.float32).reshape(1, N)

    out = pl.pallas_call(
        partial(_mm_kernel, act=act),
        out_shape=jax.ShapeDtypeStruct((Mp, N), out_dtype),
        grid=(Mp // TM,),
        in_specs=[pl.BlockSpec((TM, K), lambda i: (i, 0)),
                  pl.BlockSpec((K, N), lambda i: (0, 0)),
                  pl.BlockSpec((1, N), lambda i: (0, 0)),
                  pl.BlockSpec((1, N), lambda i: (0, 0))],
        out_specs=pl.BlockSpec((TM, N), lambda i: (i, 0)),
        compiler_params=pltpu.CompilerParams(
            dimension_semantics=("parallel",),
            vmem_limit_bytes=VMEM_LIMIT),
    )(a_p, b, s_2d, t_2d)
    return out if Mp == M else out[:M]


# ----------------------------------------------------------------------------
# Pallas kernel 2: group-wise correlation volume (tiled over groups & rows)
# bf16 inputs, f32 accumulation in-kernel, single lane-dense store, bf16 out.
# ----------------------------------------------------------------------------
def _gwc_kernel(l_ref, r_ref, o_ref, *, maxdisp):
    l = l_ref[...].astype(jnp.float32)           # (B, Cg, TH, W)
    r = r_ref[...].astype(jnp.float32)
    B, Cg, TH, W = l.shape
    inv = jnp.float32(1.0 / Cg)
    slices = []
    for d in range(maxdisp):                     # static unroll, block-local shift
        if d == 0:
            rs = r
        else:
            rs = jnp.concatenate(
                [jnp.zeros((B, Cg, TH, d), jnp.float32), r[..., : W - d]],
                axis=-1)
        slices.append(jnp.sum(l * rs, axis=1) * inv)     # (B, TH, W)
    vol = jnp.stack(slices, axis=1)                       # (B, maxdisp, TH, W)
    o_ref[...] = vol[:, None].astype(o_ref.dtype)


@partial(jax.jit, static_argnums=(2, 3))
def pallas_build_gwc_volume(left, right, maxdisp, num_groups):
    """left/right: (B, C, H, W) -> (B, G, maxdisp, H, W) bf16."""
    B, C, H, W = left.shape
    G = num_groups
    Cg = C // G
    TH = _pick_tile(H)
    return pl.pallas_call(
        partial(_gwc_kernel, maxdisp=maxdisp),
        out_shape=jax.ShapeDtypeStruct((B, G, maxdisp, H, W), jnp.bfloat16),
        grid=(G, H // TH),
        in_specs=[pl.BlockSpec((B, Cg, TH, W), lambda g, h: (0, g, h, 0)),
                  pl.BlockSpec((B, Cg, TH, W), lambda g, h: (0, g, h, 0))],
        out_specs=pl.BlockSpec((B, 1, maxdisp, TH, W),
                               lambda g, h: (0, g, 0, h, 0)),
        compiler_params=pltpu.CompilerParams(
            dimension_semantics=("parallel", "parallel"),
            vmem_limit_bytes=VMEM_LIMIT),
    )(left.astype(jnp.bfloat16), right.astype(jnp.bfloat16))


# ----------------------------------------------------------------------------
# Pallas kernel 3: softmax over disparity + disparity regression (tiled over H)
# ----------------------------------------------------------------------------
def _softmax_disp_kernel(c_ref, o_ref):
    x = c_ref[...]                               # (B, D, TH, W)
    m = jnp.max(x, axis=1, keepdims=True)
    e = jnp.exp(x - m)
    D = x.shape[1]
    dv = lax.broadcasted_iota(jnp.int32, (1, D, 1, 1), 1).astype(jnp.float32)
    num = jnp.sum(e * dv, axis=1, keepdims=True)
    den = jnp.sum(e, axis=1, keepdims=True)
    o_ref[...] = num * pl.reciprocal(den, approx=True)


@jax.jit
def pallas_softmax_disparity(cost):
    B, D, H, W = cost.shape
    TH = _pick_tile(H)
    return pl.pallas_call(
        _softmax_disp_kernel,
        out_shape=jax.ShapeDtypeStruct((B, 1, H, W), jnp.float32),
        grid=(H // TH,),
        in_specs=[pl.BlockSpec((B, D, TH, W), lambda h: (0, 0, h, 0))],
        out_specs=pl.BlockSpec((B, 1, TH, W), lambda h: (0, 0, h, 0)),
        compiler_params=pltpu.CompilerParams(
            dimension_semantics=("parallel",),
            vmem_limit_bytes=VMEM_LIMIT),
    )(cost.astype(jnp.float32))


# ----------------------------------------------------------------------------
# Pallas kernel 4: super-pixel context upsample (softmax(9) + weighted sum)
# ----------------------------------------------------------------------------
def _ctx_up_kernel(spx_ref, d_ref, o_ref):
    x = spx_ref[...]                             # (B, 9, TH, W)
    m = jnp.max(x, axis=1, keepdims=True)
    e = jnp.exp(x - m)
    num = jnp.sum(e * d_ref[...], axis=1, keepdims=True)
    den = jnp.sum(e, axis=1, keepdims=True)
    o_ref[...] = num * pl.reciprocal(den, approx=True)


@jax.jit
def pallas_context_upsample(spx_logits, disp_unfold_up):
    B, C9, H, W = spx_logits.shape
    TH = _pick_tile(H)
    return pl.pallas_call(
        _ctx_up_kernel,
        out_shape=jax.ShapeDtypeStruct((B, 1, H, W), jnp.float32),
        grid=(H // TH,),
        in_specs=[pl.BlockSpec((B, C9, TH, W), lambda h: (0, 0, h, 0)),
                  pl.BlockSpec((B, C9, TH, W), lambda h: (0, 0, h, 0))],
        out_specs=pl.BlockSpec((B, 1, TH, W), lambda h: (0, 0, h, 0)),
        compiler_params=pltpu.CompilerParams(
            dimension_semantics=("parallel",),
            vmem_limit_bytes=VMEM_LIMIT),
    )(spx_logits.astype(jnp.float32), disp_unfold_up.astype(jnp.float32))


# ----------------------------------------------------------------------------
# conv layers: NHWC/NDHWC im2col (bf16) + fused Pallas matmul epilogue
# ----------------------------------------------------------------------------
# TODO(synk): the im2col patch matrix is still materialized in HBM; a tap-grid
# accumulation kernel would remove the 9x / 27x activation traffic.
def conv2d(x, w, *, stride=1, padding=0, scale=None, shift=None,
           act="none", out_dtype=jnp.bfloat16):
    """NHWC conv. x: (B, H, W, C); w: (kh, kw, C, O) HWIO."""
    B, H, W, C = x.shape
    kh, kw, _, O = w.shape
    sh, sw = _pair(stride)
    (ph0, ph1), (pw0, pw1) = _norm_pad(padding, 2)
    oh = (H + ph0 + ph1 - kh) // sh + 1
    ow = (W + pw0 + pw1 - kw) // sw + 1
    if scale is None:
        scale = jnp.ones((O,), jnp.float32)
    if shift is None:
        shift = jnp.zeros((O,), jnp.float32)
    xb = x.astype(jnp.bfloat16)
    if (kh, kw, sh, sw, ph0, ph1, pw0, pw1) == (1, 1, 1, 1, 0, 0, 0, 0):
        patches = xb.reshape(B * H * W, C)
        wmat = w.reshape(C, O)
    else:
        xp = jnp.pad(xb, ((0, 0), (ph0, ph1), (pw0, pw1), (0, 0)))
        cols = [xp[:, ki: ki + (oh - 1) * sh + 1: sh,
                   kj: kj + (ow - 1) * sw + 1: sw, :]
                for ki in range(kh) for kj in range(kw)]
        patches = jnp.concatenate(cols, axis=-1).reshape(
            B * oh * ow, kh * kw * C)
        wmat = w.reshape(kh * kw * C, O)
    out = fused_matmul(patches, wmat.astype(jnp.bfloat16), scale, shift,
                       act=act, out_dtype=out_dtype)
    return out.reshape(B, oh, ow, O)


def conv3d(x, w, *, stride=1, padding=0, scale=None, shift=None,
           act="none", out_dtype=jnp.bfloat16):
    """NDHWC conv. x: (B, D, H, W, C); w: (kd, kh, kw, C, O)."""
    B, D, H, W, C = x.shape
    kd, kh, kw, _, O = w.shape
    sd, sh, sw = _triple(stride)
    (pd0, pd1), (ph0, ph1), (pw0, pw1) = _norm_pad(padding, 3)
    od = (D + pd0 + pd1 - kd) // sd + 1
    oh = (H + ph0 + ph1 - kh) // sh + 1
    ow = (W + pw0 + pw1 - kw) // sw + 1
    if scale is None:
        scale = jnp.ones((O,), jnp.float32)
    if shift is None:
        shift = jnp.zeros((O,), jnp.float32)
    xb = x.astype(jnp.bfloat16)
    if (kd, kh, kw, sd, sh, sw) == (1, 1, 1, 1, 1, 1) and \
            (pd0, pd1, ph0, ph1, pw0, pw1) == (0, 0, 0, 0, 0, 0):
        patches = xb.reshape(B * D * H * W, C)
        wmat = w.reshape(C, O)
    else:
        xp = jnp.pad(xb, ((0, 0), (pd0, pd1), (ph0, ph1), (pw0, pw1), (0, 0)))
        cols = [xp[:, ki: ki + (od - 1) * sd + 1: sd,
                   kj: kj + (oh - 1) * sh + 1: sh,
                   kk: kk + (ow - 1) * sw + 1: sw, :]
                for ki in range(kd) for kj in range(kh) for kk in range(kw)]
        patches = jnp.concatenate(cols, axis=-1).reshape(
            B * od * oh * ow, kd * kh * kw * C)
        wmat = w.reshape(kd * kh * kw * C, O)
    out = fused_matmul(patches, wmat.astype(jnp.bfloat16), scale, shift,
                       act=act, out_dtype=out_dtype)
    return out.reshape(B, od, oh, ow, O)


# --- transposed convs (all are k=4, s=2, p=1) --------------------------------
# ConvTranspose(k=4,s=2,p=1) == one k=3, s=1, p=1 conv with 4 (2-D) / 8 (3-D)
# phase-batched output-channel groups (zero-padded taps), followed by a single
# depth-to-space interleave.  Per output phase r (even/odd):
#   even:  out[2m]   = x[m-1]*w[3] + x[m]*w[1]
#   odd:   out[2m+1] = x[m]  *w[2] + x[m+1]*w[0]
# so, on the 3-tap window of pad(x,1):  even -> taps (0,1) <- kernel idx (3,1),
#                                       odd  -> taps (1,2) <- kernel idx (2,0).
_T3 = {0: ((0, 3), (1, 1)), 1: ((1, 2), (2, 0))}


def _combined_deconv_weight_2d(w_t):
    """w_t: (C, O, 4, 4) -> (3, 3, C, 4*O), phase order (rh, rw, o)."""
    C, O = w_t.shape[0], w_t.shape[1]
    wc = jnp.zeros((3, 3, C, 2, 2, O), w_t.dtype)
    for rh in (0, 1):
        for (ti, ki) in _T3[rh]:
            for rw in (0, 1):
                for (tj, kj) in _T3[rw]:
                    wc = wc.at[ti, tj, :, rh, rw, :].set(w_t[:, :, ki, kj])
    return wc.reshape(3, 3, C, 4 * O)


def _combined_deconv_weight_3d(w_t):
    """w_t: (C, O, 4, 4, 4) -> (3, 3, 3, C, 8*O), phase order (rd, rh, rw, o)."""
    C, O = w_t.shape[0], w_t.shape[1]
    wc = jnp.zeros((3, 3, 3, C, 2, 2, 2, O), w_t.dtype)
    for rd in (0, 1):
        for (td, kd) in _T3[rd]:
            for rh in (0, 1):
                for (th, kh) in _T3[rh]:
                    for rw in (0, 1):
                        for (tw, kw) in _T3[rw]:
                            wc = wc.at[td, th, tw, :, rd, rh, rw, :].set(
                                w_t[:, :, kd, kh, kw])
    return wc.reshape(3, 3, 3, C, 8 * O)


def conv_transpose2d_k4s2p1(x, w_t, *, scale=None, shift=None, act="none",
                            out_dtype=jnp.bfloat16):
    """PyTorch ConvTranspose2d(k=4, s=2, p=1); x NHWC, w_t: (C_in, O, 4, 4)."""
    O = w_t.shape[1]
    if scale is None:
        scale = jnp.ones((O,), jnp.float32)
    if shift is None:
        shift = jnp.zeros((O,), jnp.float32)
    wc = _combined_deconv_weight_2d(w_t)
    y = conv2d(x, wc, stride=1, padding=1,
               scale=jnp.tile(scale, 4), shift=jnp.tile(shift, 4),
               act=act, out_dtype=out_dtype)                   # (B, H, W, 4O)
    B, oh, ow, _ = y.shape
    y = y.reshape(B, oh, ow, 2, 2, O).transpose(0, 1, 3, 2, 4, 5)
    return y.reshape(B, 2 * oh, 2 * ow, O)


def conv_transpose3d_k4s2p1(x, w_t, *, scale=None, shift=None, act="none",
                            out_dtype=jnp.bfloat16):
    """PyTorch ConvTranspose3d(k=4, s=2, p=1); x NDHWC, w_t: (C_in, O, 4,4,4)."""
    O = w_t.shape[1]
    if scale is None:
        scale = jnp.ones((O,), jnp.float32)
    if shift is None:
        shift = jnp.zeros((O,), jnp.float32)
    wc = _combined_deconv_weight_3d(w_t)
    y = conv3d(x, wc, stride=1, padding=1,
               scale=jnp.tile(scale, 8), shift=jnp.tile(shift, 8),
               act=act, out_dtype=out_dtype)                   # (B, D, H, W, 8O)
    B, od, oh, ow, _ = y.shape
    y = y.reshape(B, od, oh, ow, 2, 2, 2, O).transpose(0, 1, 4, 2, 5, 3, 6, 7)
    return y.reshape(B, 2 * od, 2 * oh, 2 * ow, O)


# ----------------------------------------------------------------------------
# norms / activations
# ----------------------------------------------------------------------------
# TODO(synk): fuse IN+LeakyReLU/ReLU and sigmoid(att)*cv into Pallas kernels.
def leaky_relu(x, slope=0.01):
    return jnp.where(x >= 0, x, slope * x)


def instance_norm(x, eps=1e-5):
    """Affine-free InstanceNorm on channel-last tensors (stats in f32)."""
    axes = tuple(range(1, x.ndim - 1))
    xf = x.astype(jnp.float32)
    mean = jnp.mean(xf, axis=axes, keepdims=True)
    var = jnp.mean((xf - mean) ** 2, axis=axes, keepdims=True)
    return ((xf - mean) * lax.rsqrt(var + eps)).astype(x.dtype)


# ----------------------------------------------------------------------------
# parameters (deterministic synthetic init)
# ----------------------------------------------------------------------------
class ParamGen:
    def __init__(self, seed=0):
        self._key = jax.random.PRNGKey(seed)
        self._i = 0

    def key(self):
        self._i += 1
        return jax.random.fold_in(self._key, self._i)


def make_conv(rng, cin, cout, ks, *, deconv=False, bias=True):
    fan_in = cin * int(math.prod(ks))
    std = 1.0 / math.sqrt(fan_in)
    shape = ((cin, cout) + tuple(ks)) if deconv else (tuple(ks) + (cin, cout))
    w = jax.random.uniform(rng.key(), shape, jnp.float32, -std, std)
    b = (jax.random.uniform(rng.key(), (cout,), jnp.float32, -std, std)
         if bias else None)
    return {"w": w, "b": b}


def make_bn(cout):
    return {"gamma": jnp.ones((cout,), jnp.float32),
            "beta": jnp.zeros((cout,), jnp.float32),
            "mean": jnp.zeros((cout,), jnp.float32),
            "var": jnp.ones((cout,), jnp.float32)}


def make_basic_conv(rng, cin, cout, *, is_3d=False, deconv=False, norm="bn",
                    use_norm=True, relu=True, kernel_size=3, stride=1, padding=0):
    ks = kernel_size if isinstance(kernel_size, tuple) else (
        (kernel_size,) * (3 if is_3d else 2))
    return {"conv": make_conv(rng, cin, cout, ks, deconv=deconv, bias=False),
            "bn": make_bn(cout) if (use_norm and norm == "bn") else None,
            "cfg": dict(is_3d=is_3d, deconv=deconv, norm=norm, use_norm=use_norm,
                        relu=relu, stride=stride, padding=padding)}


def apply_basic_conv(m, x, out_dtype=jnp.bfloat16):
    cfg = m["cfg"]
    w, b = m["conv"]["w"], m["conv"]["b"]
    O = w.shape[1] if cfg["deconv"] else w.shape[-1]
    bias = b if b is not None else jnp.zeros((O,), jnp.float32)
    post_in = False
    if cfg["use_norm"] and cfg["norm"] == "bn":
        bn = m["bn"]
        scale = bn["gamma"] / jnp.sqrt(bn["var"] + 1e-5)
        shift = (bias - bn["mean"]) * scale + bn["beta"]
        act = "leaky" if cfg["relu"] else "none"
    elif cfg["use_norm"]:                         # instance norm: post-apply
        scale = jnp.ones((O,), jnp.float32)
        shift = bias
        act = "none"
        post_in = True
    else:
        scale = jnp.ones((O,), jnp.float32)
        shift = bias
        act = "leaky" if cfg["relu"] else "none"

    if cfg["deconv"]:
        # all transposed convs in IGEVStereo are kernel=4, stride=2, padding=1
        fn = conv_transpose3d_k4s2p1 if cfg["is_3d"] else conv_transpose2d_k4s2p1
        x = fn(x, w, scale=scale, shift=shift, act=act, out_dtype=out_dtype)
    else:
        fn = conv3d if cfg["is_3d"] else conv2d
        x = fn(x, w, stride=cfg["stride"], padding=cfg["padding"],
               scale=scale, shift=shift, act=act, out_dtype=out_dtype)
    if post_in:
        x = instance_norm(x)
        if cfg["relu"]:
            x = leaky_relu(x)
    return x


def make_feature_att(rng, cv_chan, feat_chan):
    return {"att0": make_basic_conv(rng, feat_chan, feat_chan // 2,
                                    kernel_size=1, stride=1, padding=0),
            "att1": make_conv(rng, feat_chan // 2, cv_chan, (1, 1), bias=True)}


def apply_feature_att(m, cv, feat):
    a = apply_basic_conv(m["att0"], feat)                       # BN+leaky fused
    a = conv2d(a, m["att1"]["w"], shift=m["att1"]["b"])         # 1x1 + bias fused
    a = jax.nn.sigmoid(a)                                       # (B, H, W, Ccv)
    return cv * a[:, None]                                      # broadcast over D


def make_hourglass(rng, ic):
    def bc3(ci, co, s):
        return make_basic_conv(rng, ci, co, is_3d=True, kernel_size=3,
                               padding=1, stride=s)
    return {
        "conv1": [bc3(ic, ic * 2, 2), bc3(ic * 2, ic * 2, 1)],
        "conv2": [bc3(ic * 2, ic * 4, 2), bc3(ic * 4, ic * 4, 1)],
        "conv3": [bc3(ic * 4, ic * 6, 2), bc3(ic * 6, ic * 6, 1)],
        "conv3_up": make_basic_conv(rng, ic * 6, ic * 4, is_3d=True, deconv=True,
                                    kernel_size=(4, 4, 4), padding=(1, 1, 1),
                                    stride=(2, 2, 2)),
        "conv2_up": make_basic_conv(rng, ic * 4, ic * 2, is_3d=True, deconv=True,
                                    kernel_size=(4, 4, 4), padding=(1, 1, 1),
                                    stride=(2, 2, 2)),
        "conv1_up": make_basic_conv(rng, ic * 2, 8, is_3d=True, deconv=True,
                                    use_norm=False, relu=False,
                                    kernel_size=(4, 4, 4), padding=(1, 1, 1),
                                    stride=(2, 2, 2)),
        "agg_0": [make_basic_conv(rng, ic * 8, ic * 4, is_3d=True,
                                  kernel_size=1, padding=0, stride=1),
                  bc3(ic * 4, ic * 4, 1), bc3(ic * 4, ic * 4, 1)],
        "agg_1": [make_basic_conv(rng, ic * 4, ic * 2, is_3d=True,
                                  kernel_size=1, padding=0, stride=1),
                  bc3(ic * 2, ic * 2, 1), bc3(ic * 2, ic * 2, 1)],
        "feature_att_8": make_feature_att(rng, ic * 2, 64),
        "feature_att_16": make_feature_att(rng, ic * 4, 192),
        "feature_att_32": make_feature_att(rng, ic * 6, 160),
        "feature_att_up_16": make_feature_att(rng, ic * 4, 192),
        "feature_att_up_8": make_feature_att(rng, ic * 2, 64),
    }


def apply_hourglass(m, x, features):
    c1 = apply_basic_conv(m["conv1"][0], x)
    c1 = apply_basic_conv(m["conv1"][1], c1)
    c1 = apply_feature_att(m["feature_att_8"], c1, features[1])
    c2 = apply_basic_conv(m["conv2"][0], c1)
    c2 = apply_basic_conv(m["conv2"][1], c2)
    c2 = apply_feature_att(m["feature_att_16"], c2, features[2])
    c3 = apply_basic_conv(m["conv3"][0], c2)
    c3 = apply_basic_conv(m["conv3"][1], c3)
    c3 = apply_feature_att(m["feature_att_32"], c3, features[3])
    c3_up = apply_basic_conv(m["conv3_up"], c3)
    c2 = jnp.concatenate([c3_up, c2], axis=-1)
    for layer in m["agg_0"]:
        c2 = apply_basic_conv(layer, c2)
    c2 = apply_feature_att(m["feature_att_up_16"], c2, features[2])
    c2_up = apply_basic_conv(m["conv2_up"], c2)
    c1 = jnp.concatenate([c2_up, c1], axis=-1)
    for layer in m["agg_1"]:
        c1 = apply_basic_conv(layer, c1)
    c1 = apply_feature_att(m["feature_att_up_8"], c1, features[1])
    return apply_basic_conv(m["conv1_up"], c1)


def make_stem_like(rng, cin, cout, stride):
    return {"bc": make_basic_conv(rng, cin, cout, norm="in", kernel_size=3,
                                  stride=stride, padding=1),
            "conv": make_conv(rng, cout, cout, (3, 3), bias=False)}


def apply_stem(m, x):
    x = apply_basic_conv(m["bc"], x)                    # conv -> IN -> leaky
    x = conv2d(x, m["conv"]["w"], stride=1, padding=1)  # 3x3, no bias
    x = instance_norm(x)
    return jnp.maximum(x, 0)


def make_conv2x_in(rng, cin, cout):
    return {"conv1": make_basic_conv(rng, cin, cout, deconv=True, norm="in",
                                     kernel_size=4, stride=2, padding=1),
            "conv2": make_basic_conv(rng, cout * 2, cout * 2, norm="in",
                                     kernel_size=3, stride=1, padding=1)}


def apply_conv2x_in(m, x, rem):
    x = apply_basic_conv(m["conv1"], x)
    x = jnp.concatenate([x, rem], axis=-1)
    return apply_basic_conv(m["conv2"], x)


def make_igev_params(seed=0):
    rng = ParamGen(seed)
    return {
        "stem_2": make_stem_like(rng, 3, 32, 2),
        "stem_4": make_stem_like(rng, 32, 48, 2),
        "conv": make_basic_conv(rng, 96, 96, norm="in", kernel_size=3,
                                stride=1, padding=1),
        "desc": make_conv(rng, 96, 96, (1, 1), bias=True),
        "corr_stem": make_basic_conv(rng, 8, 8, is_3d=True, kernel_size=3,
                                     stride=1, padding=1),
        "corr_feature_att": make_feature_att(rng, 8, 96),
        "cost_agg": make_hourglass(rng, 8),
        "classifier": make_conv(rng, 8, 1, (3, 3, 3), bias=False),
        "spx_4": make_stem_like(rng, 96, 24, 1),
        "spx_2": make_conv2x_in(rng, 24, 32),
        "spx": make_conv(rng, 64, 9, (4, 4), deconv=True, bias=True),
        # TODO(synk): MultiBasicEncoder (cnet), context_zqr_convs,
        # BasicMultiUpdateBlock, spx_2_gru / spx_gru and
        # Combined_Geo_Encoding_Volume were not provided; the GRU refinement
        # loop is omitted.
    }


# ----------------------------------------------------------------------------
# forward
# ----------------------------------------------------------------------------
def _unfold3x3(x):
    # F.unfold(x, 3, 1, 1) for a single-channel map -> (B, 9, H, W)
    B, C, H, W = x.shape
    xp = jnp.pad(x, ((0, 0), (0, 0), (1, 1), (1, 1)))
    cols = [xp[:, 0, ki: ki + H, kj: kj + W] for ki in range(3) for kj in range(3)]
    return jnp.stack(cols, axis=1)


def igev_forward(params, features_left, features_right, image1, image2,
                 max_disp=32, iters=12):
    B = image1.shape[0]
    to_nhwc = lambda t: jnp.transpose(t, (0, 2, 3, 1))

    # NCHW -> NHWC once, at the module boundary
    images = to_nhwc(jnp.concatenate([image1, image2], axis=0))
    fl = [to_nhwc(f).astype(jnp.bfloat16) for f in features_left]
    fr0 = to_nhwc(features_right[0]).astype(jnp.bfloat16)

    # batched stems: left + right images in one pass
    stem_2 = apply_stem(params["stem_2"], images)        # (2B, H/2, W/2, 32)
    stem_4 = apply_stem(params["stem_4"], stem_2)        # (2B, H/4, W/4, 48)
    stem_2x = stem_2[:B]
    stem_4x, stem_4y = stem_4[:B], stem_4[B:]

    feat_l0 = jnp.concatenate([fl[0], stem_4x], axis=-1)          # 96 ch
    feat_r0 = jnp.concatenate([fr0, stem_4y], axis=-1)

    # batched descriptor branch (conv + desc 1x1)
    feats = jnp.concatenate([feat_l0, feat_r0], axis=0)
    m = apply_basic_conv(params["conv"], feats)
    m = conv2d(m, params["desc"]["w"], shift=params["desc"]["b"])
    match_left, match_right = m[:B], m[B:]

    # gwc volume kernel runs in NCHW; volume is moved to NDHWC once for the
    # 3-D conv pipeline (boundary conversion only).
    ml = jnp.transpose(match_left, (0, 3, 1, 2))
    mr = jnp.transpose(match_right, (0, 3, 1, 2))
    gwc_volume = pallas_build_gwc_volume(ml, mr, max_disp // 4, 8)
    gwc_volume = jnp.transpose(gwc_volume, (0, 2, 3, 4, 1))       # (B,D,H4,W4,8)

    gwc_volume = apply_basic_conv(params["corr_stem"], gwc_volume)
    gwc_volume = apply_feature_att(params["corr_feature_att"], gwc_volume,
                                   feat_l0)
    geo_encoding_volume = apply_hourglass(
        params["cost_agg"], gwc_volume, [feat_l0, fl[1], fl[2], fl[3]])

    cost = conv3d(geo_encoding_volume, params["classifier"]["w"],
                  stride=1, padding=1, out_dtype=jnp.float32)     # (B,D,H4,W4,1)
    init_disp = pallas_softmax_disparity(cost[..., 0])            # (B,1,H4,W4)

    xspx = apply_stem(params["spx_4"], feat_l0)
    xspx = apply_conv2x_in(params["spx_2"], xspx, stem_2x)
    spx_logits = conv_transpose2d_k4s2p1(xspx, params["spx"]["w"],
                                         shift=params["spx"]["b"],
                                         out_dtype=jnp.float32)   # (B,H,W,9)

    # TODO(synk): iterative GRU refinement (cnet / update_block /
    # Combined_Geo_Encoding_Volume) omitted -- definitions not provided.
    disp_preds = []

    # init_disp = context_upsample(init_disp * 4.0, softmax(spx_pred)).unsqueeze(1)
    dunf = _unfold3x3(init_disp * 4.0)                            # (B,9,H/4,W/4)
    # TODO(synk): fold the x4 nearest replication into the context-upsample
    # kernel (index_map or in-VMEM repeat) to avoid this HBM materialization.
    dunf = jnp.repeat(jnp.repeat(dunf, 4, axis=2), 4, axis=3)     # nearest x4
    spx_nchw = jnp.transpose(spx_logits, (0, 3, 1, 2))            # (B,9,H,W)
    init_disp_up = pallas_context_upsample(spx_nchw, dunf)        # (B,1,H,W)
    return init_disp_up, disp_preds


# ----------------------------------------------------------------------------
# main
# ----------------------------------------------------------------------------
if __name__ == "__main__":
    B, H, W = 1, 32, 32
    max_disp = 32

    key = jax.random.PRNGKey(0)
    ks = jax.random.split(key, 7)
    image1 = jax.random.normal(ks[0], (B, 3, H, W), jnp.float32)
    image2 = jax.random.normal(ks[1], (B, 3, H, W), jnp.float32)
    # backbone pyramid (left): 48ch@1/4, 64ch@1/8, 192ch@1/16, 160ch@1/32
    features_left = [
        jax.random.normal(ks[2], (B, 48, H // 4, W // 4), jnp.float32),
        jax.random.normal(ks[3], (B, 64, H // 8, W // 8), jnp.float32),
        jax.random.normal(ks[4], (B, 192, H // 16, W // 16), jnp.float32),
        jax.random.normal(ks[5], (B, 160, H // 32, W // 32), jnp.float32),
    ]
    features_right = [
        jax.random.normal(ks[6], (B, 48, H // 4, W // 4), jnp.float32),
        features_left[1], features_left[2], features_left[3],  # only [0] used
    ]

    params = make_igev_params(seed=0)

    fwd = jax.jit(lambda fl, fr, i1, i2: igev_forward(
        params, fl, fr, i1, i2, max_disp=max_disp))
    init_disp, disp_preds = fwd(features_left, features_right, image1, image2)
    init_disp = jax.block_until_ready(init_disp)
    assert init_disp.shape == (B, 1, H, W)
    assert bool(jnp.all(jnp.isfinite(init_disp)))
    print("KERNEL_OK")
</pallas_src>

<mosaic_0001>
module attributes {stable_mosaic.version = 11 : i64} {
  func.func @_mm_kernel(%arg0: i32, %arg1: memref<256x27xbf16, #tpu.memory_space<vmem>>, %arg2: memref<27x32xbf16, #tpu.memory_space<vmem>>, %arg3: memref<1x32xf32, #tpu.memory_space<vmem>>, %arg4: memref<1x32xf32, #tpu.memory_space<vmem>>, %arg5: memref<256x32xbf16, #tpu.memory_space<vmem>>) attributes {dimension_semantics = [#tpu.dimension_semantics<parallel>], iteration_bounds = array<i64: 2>, scalar_prefetch = 0 : i64, scratch_operands = 0 : i64, tpu.core_type = #tpu.core_type<tc>, window_params = [{transform_indices = @transform_0, window_bounds = array<i64: 256, 27>}, {pipeline_mode = #tpu.pipeline_mode<synchronous>, transform_indices = @transform_1, window_bounds = array<i64: 27, 32>}, {pipeline_mode = #tpu.pipeline_mode<synchronous>, transform_indices = @transform_2, window_bounds = array<i64: 1, 32>}, {pipeline_mode = #tpu.pipeline_mode<synchronous>, transform_indices = @transform_3, window_bounds = array<i64: 1, 32>}, {transform_indices = @transform_4, window_bounds = array<i64: 256, 32>}]} {
    %c0 = arith.constant 0 : index
    %c0_0 = arith.constant 0 : index
    %0 = vector.load %arg1[%c0, %c0_0] : memref<256x27xbf16, #tpu.memory_space<vmem>>, vector<256x27xbf16>
    %c0_1 = arith.constant 0 : index
    %c0_2 = arith.constant 0 : index
    %1 = vector.load %arg2[%c0_1, %c0_2] : memref<27x32xbf16, #tpu.memory_space<vmem>>, vector<27x32xbf16>
    %cst = arith.constant dense<0.000000e+00> : vector<256x32xf32>
    %2 = tpu.matmul %0, %1, %cst {dimension_numbers = #tpu.dot_dimension_numbers<[1], [0], [0], [1], [0, 0, 1, 1], [], []>} : vector<256x27xbf16>, vector<27x32xbf16>, vector<256x32xf32> -> vector<256x32xf32>
    %c0_3 = arith.constant 0 : index
    %c0_4 = arith.constant 0 : index
    %3 = vector.load %arg3[%c0_3, %c0_4] : memref<1x32xf32, #tpu.memory_space<vmem>>, vector<1x32xf32>
    %4 = vector.broadcast %3 : vector<1x32xf32> to vector<256x32xf32>
    %5 = arith.mulf %2, %4 : vector<256x32xf32>
    %c0_5 = arith.constant 0 : index
    %c0_6 = arith.constant 0 : index
    %6 = vector.load %arg4[%c0_5, %c0_6] : memref<1x32xf32, #tpu.memory_space<vmem>>, vector<1x32xf32>
    %7 = vector.broadcast %6 : vector<1x32xf32> to vector<256x32xf32>
    %8 = arith.addf %5, %7 : vector<256x32xf32>
    %9 = arith.truncf %8 : vector<256x32xf32> to vector<256x32xbf16>
    %c0_7 = arith.constant 0 : index
    %c0_8 = arith.constant 0 : index
    %10 = vector.load %arg5[%c0_7, %c0_8] : memref<256x32xbf16, #tpu.memory_space<vmem>>, vector<256x32xbf16>
    tpu.vector_store %arg5[%c0_7, %c0_8], %9 {strides = array<i32>} : memref<256x32xbf16, #tpu.memory_space<vmem>>, vector<256x32xbf16>,
    return
  }
  func.func @transform_0(%arg0: i32) -> (i32, i32) {
    %c0_i32 = arith.constant 0 : i32
    %c0_i32_0 = arith.constant 0 : i32
    return %arg0, %c0_i32 : i32, i32
  }
  func.func @transform_1(%arg0: i32) -> (i32, i32) {
    %c0_i32 = arith.constant 0 : i32
    %c0_i32_0 = arith.constant 0 : i32
    %c0_i32_1 = arith.constant 0 : i32
    return %c0_i32, %c0_i32_0 : i32, i32
  }
  func.func @transform_2(%arg0: i32) -> (i32, i32) {
    %c0_i32 = arith.constant 0 : i32
    %c0_i32_0 = arith.constant 0 : i32
    %c0_i32_1 = arith.constant 0 : i32
    return %c0_i32, %c0_i32_0 : i32, i32
  }
  func.func @transform_3(%arg0: i32) -> (i32, i32) {
    %c0_i32 = arith.constant 0 : i32
    %c0_i32_0 = arith.constant 0 : i32
    %c0_i32_1 = arith.constant 0 : i32
    return %c0_i32, %c0_i32_0 : i32, i32
  }
  func.func @transform_4(%arg0: i32) -> (i32, i32) {
    %c0_i32 = arith.constant 0 : i32
    %c0_i32_0 = arith.constant 0 : i32
    return %arg0, %c0_i32 : i32, i32
  }
}

</mosaic_0001>

<bundles_post_ra>
// kernel: fused_matmul.1
= control target key start
LH: loop header
LB: loop body
LE: loop exit
PB: predicated region body
PF: predicated region fallthrough
CT: control target
= control target key end

     0   :  { %s1071_s15 = smov 0   ;;  %s1275_s0 = inlined_call_operand.vmem [shape: bf16[512,27], index: 0, kind: input, shape index: {}]   ;;  %s1276_s1 = inlined_call_operand.vmem [shape: bf16[27,32], index: 1, kind: input, shape index: {}]   ;;  %s1277_s2 = inlined_call_operand.vmem [shape: f32[1,32], index: 2, kind: input, shape index: {}]   ;;  %s1278_s3 = inlined_call_operand.vmem [shape: f32[1,32], index: 3, kind: input, shape index: {}]   ;;  %s1279_s4 = inlined_call_operand.vmem [shape: bf16[512,32], index: 4, kind: output, shape index: {}]  }
   0x1 LB: > { %s841_s16 = sadd.s32 4294967295, %s1043_s15   ;;  %p845_p0 = scmp.ge.s32.totalorder %s1043_s15, 1  ;;  %s1043_s15 = sphi %s1071_s15, %s14_s15  }
   0x2   : > { %p163_p1 = scmp.lt.s32.totalorder %s1043_s15, 3 }
   0x4   : > { %p164_p2 = pnand %p845_p0, %p163_p1 }
   0x5   : > { %s846_s19 = sshll.u32 (!%p164_p2), %s841_s16, 5 }
   0x6   : > { %167 = sbr.rel (%p164_p2) target bundleno = 254 (0xfe), region = 36  ;;  %p190_p3 = scmp.lt.s32.totalorder (!%p164_p2), %s846_s19, 63 }
   0xb   : > { %v1019_v0 = vld [vmem:[%s1276_s1 + $0x8] sm:$0x3f]   ;;  %vm378_vm0 = vcmask 1044480   ;;  %vm379_vm1 = vcmask 1045504   ;;  %v1045_v1 = vmov 65535   ;;  %v1020_v5 = vld [vmem:[%s1276_s1] sm:$0xff]  }
   0xc   : > { %v380_v2 = vsel %vm378_vm0, 4294967295, %v1045_v1  ;;  %s1281_s19 = smov (!%p190_p3, %s846_s19), 63  ;;  %vm329_vm2 = vcmask 220160   ;;  %v1130_v22 = vld [vmem:[%s1277_s2] ss:$0 sm:$0xff]  ;;  %vm752_vm3 = vcmask 257024  }
   0xd   : > { %v381_v3 = vsel %vm379_vm1, %v380_v2, 0  ;;  %s847_s22 = sshll.u32 %s1281_s19, 2  ;;  %v1135_v24 = vld [vmem:[%s1278_s3] ss:$0 sm:$0xff] }
   0xe   : > { %v383_v4 = vand.u32 %v1019_v0, %v381_v3  ;;  %s1093_s25 = scalar_lea.vmem %s1275_s0, %s847_s22  ;;  %s1148_s6 = scalar_lea.vmem %s1279_s4, %s847_s22 }
   0xf   : > { %v1021_v6 = vld [vmem:[%s1093_s25] sm:$0xff]   ;;  %v1023_v8 = vld [vmem:[%s1093_s25 + $0x8] sm:$0xff]   ;;  %v1025_v10 = vld [vmem:[%s1093_s25 + $0x10] sm:$0xff]  }
  0x10   : > { %970 = vmatprep.subr.bf16.mxu0 %v383_v4  ;;  %1006 = vmatprep.subr.bf16.mxu1 %v383_v4  ;;  %v1022_v7 = vld [vmem:[%s1093_s25 + $0x40] sm:$0xff]   ;;  %v1024_v9 = vld [vmem:[%s1093_s25 + $0x48] sm:$0xff]   ;;  %v1026_v11 = vld [vmem:[%s1093_s25 + $0x50] sm:$0xff]  }
  0x11   : > { %971 = vmatpush3.bf16.msra.mxu0 %v383_v4  ;;  %1008 = vmatpush3.bf16.msra.mxu1 %v383_v4  ;;  %v1027_v12 = vld [vmem:[%s1093_s25 + $0x18] sm:$0xff]   ;;  %v1029_v14 = vld [vmem:[%s1093_s25 + $0x20] sm:$0xff]   ;;  %v1031_v16 = vld [vmem:[%s1093_s25 + $0x28] sm:$0xff]  }
  0x12   : > { %972 = vmatprep.subr.bf16.mxu0 %v1020_v5  ;;  %1007 = vmatprep.subr.bf16.mxu1 %v1020_v5  ;;  %v1028_v13 = vld [vmem:[%s1093_s25 + $0x58] sm:$0xff]   ;;  %v1030_v15 = vld [vmem:[%s1093_s25 + $0x60] sm:$0xff]   ;;  %v1032_v17 = vld [vmem:[%s1093_s25 + $0x68] sm:$0xff]  }
  0x13   : > { %974 = vmatprep.mubr.msk.bf16.mxu0 %vm329_vm2, %v1021_v6  ;;  %990 = vmatprep.mubr.msk.bf16.mxu1 %vm329_vm2, %v1022_v7  ;;  %v1033_v18 = vld [vmem:[%s1093_s25 + $0x30] sm:$0xff]   ;;  %v1035_v20 = vld [vmem:[%s1093_s25 + $0x38] sm:$0xff]  }
  0x14   : > { %v1034_v19 = vld [vmem:[%s1093_s25 + $0x70] sm:$0xff]   ;;  %v1036_v21 = vld [vmem:[%s1093_s25 + $0x78] sm:$0xff]  }
  0x15   : > { %973 = vmatpush3.bf16.msra.mxu0 %v1020_v5  ;;  %1009 = vmatpush3.bf16.msra.mxu1 %v1020_v5 }
  0x18   : > { %975 = vmatmul.mubr.msk.bf16.vlgmr.msra.gmra.mxu0 %vm329_vm2, %v1023_v8  ;;  %991 = vmatmul.mubr.msk.bf16.vlgmr.msra.gmra.mxu1 %vm329_vm2, %v1024_v9 }
  0x19   : > { %978 = vmatprep.mubr.msk.bf16.mxu0 %vm329_vm2, %v1025_v10  ;;  %994 = vmatprep.mubr.msk.bf16.mxu1 %vm329_vm2, %v1026_v11 }
  0x20   : > { %979 = vmatmul.mubr.msk.bf16.gmra.mxu0 %vm329_vm2, %v1027_v12  ;;  %995 = vmatmul.mubr.msk.bf16.gmra.mxu1 %vm329_vm2, %v1028_v13 }
  0x21   : > { %982 = vmatprep.mubr.msk.bf16.mxu0 %vm329_vm2, %v1029_v14  ;;  %998 = vmatprep.mubr.msk.bf16.mxu1 %vm329_vm2, %v1030_v15 }
  0x28   : > { %983 = vmatmul.mubr.msk.bf16.gmra.mxu0 %vm329_vm2, %v1031_v16  ;;  %999 = vmatmul.mubr.msk.bf16.gmra.mxu1 %vm329_vm2, %v1032_v17 }
  0x29   : > { %986 = vmatprep.mubr.msk.bf16.mxu0 %vm329_vm2, %v1033_v18  ;;  %1002 = vmatprep.mubr.msk.bf16.mxu1 %vm329_vm2, %v1034_v19 }
  0x30   : > { %987 = vmatmul.mubr.msk.bf16.gmra.mxu0 %vm329_vm2, %v1035_v20  ;;  %1003 = vmatmul.mubr.msk.bf16.gmra.mxu1 %vm329_vm2, %v1036_v21 }
  0xd8   : > { %v976_v23 = vpop.f32.mrf.mxu0  ;;  %v992_v25 = vpop.f32.mrf.mxu1 }
  0xd9   : > { %v555_v26 = vmul.f32 %v976_v23, %v1130_v22  ;;  %v571_v27 = vmul.f32 %v992_v25, %v1130_v22 }
  0xda   : > { %v419_v28 = vpop.f32.mrf.mxu0  ;;  %v483_v29 = vpop.f32.mrf.mxu1 }
  0xdb   : > { %v594_v30 = vadd.f32 %v1135_v24, %v555_v26  ;;  %v610_v31 = vadd.f32 %v1135_v24, %v571_v27  ;;  %v553_v32 = vmul.f32 %v1130_v22, %v419_v28  ;;  %v569_v33 = vmul.f32 %v1130_v22, %v483_v29 }
  0xdc   : > { %v977_v34 = vpop.f32.mrf.mxu0  ;;  %v993_v35 = vpop.f32.mrf.mxu1 }
  0xdd   : > { %v922_v36 = vpack.c.bf16 %v594_v30, %v594_v30  ;;  %v938_v37 = vpack.c.bf16 %v610_v31, %v610_v31  ;;  %v592_v38 = vadd.f32 %v1135_v24, %v553_v32  ;;  %v608_v39 = vadd.f32 %v1135_v24, %v569_v33 }
  0xde   : > { %v556_v40 = vmul.f32 %v977_v34, %v1130_v22  ;;  %v572_v41 = vmul.f32 %v993_v35, %v1130_v22  ;;  %v422_v42 = vpop.f32.mrf.mxu0  ;;  %v486_v43 = vpop.f32.mrf.mxu1 }
  0xdf   : > { %755 = vst.msk [vmem:[%s1148_s6 + $0x8] sm:$0xf] %vm752_vm3, %v922_v36  ;;  %771 = vst.msk [vmem:[%s1148_s6 + $0x48] sm:$0xf] %vm752_vm3, %v938_v37  ;;  %v920_v44 = vpack.c.bf16 %v592_v38, %v592_v38  ;;  %v936_v45 = vpack.c.bf16 %v608_v39, %v608_v39  ;;  %v554_v46 = vmul.f32 %v1130_v22, %v422_v42 }
  0xe0   : > { %v570_v47 = vmul.f32 %v1130_v22, %v486_v43  ;;  %v595_v48 = vadd.f32 %v1135_v24, %v556_v40  ;;  %v611_v49 = vadd.f32 %v1135_v24, %v572_v41  ;;  %v980_v50 = vpop.f32.mrf.mxu0  ;;  %v996_v51 = vpop.f32.mrf.mxu1 }
  0xe1   : > { %753 = vst.msk [vmem:[%s1148_s6] sm:$0xf] %vm752_vm3, %v920_v44  ;;  %769 = vst.msk [vmem:[%s1148_s6 + $0x40] sm:$0xf] %vm752_vm3, %v936_v45  ;;  %v593_v52 = vadd.f32 %v1135_v24, %v554_v46  ;;  %v559_v54 = vmul.f32 %v980_v50, %v1130_v22  ;;  %v575_v55 = vmul.f32 %v996_v51, %v1130_v22 }
  0xe2   : > { %v609_v53 = vadd.f32 %v1135_v24, %v570_v47  ;;  %v923_v56 = vpack.c.bf16 %v595_v48, %v595_v48  ;;  %v939_v57 = vpack.c.bf16 %v611_v49, %v611_v49  ;;  %v435_v58 = vpop.f32.mrf.mxu0  ;;  %v499_v59 = vpop.f32.mrf.mxu1 }
  0xe3   : > { %v921_v60 = vpack.c.bf16 %v593_v52, %v593_v52  ;;  %v598_v62 = vadd.f32 %v1135_v24, %v559_v54  ;;  %v614_v63 = vadd.f32 %v1135_v24, %v575_v55  ;;  %v557_v0 = vmul.f32 %v1130_v22, %v435_v58 }
  0xe4   : > { %v937_v61 = vpack.c.bf16 %v609_v53, %v609_v53  ;;  %756 = vst.msk [vmem:[%s1148_s6 + $0xc] sm:$0xf] %vm752_vm3, %v923_v56  ;;  %772 = vst.msk [vmem:[%s1148_s6 + $0x4c] sm:$0xf] %vm752_vm3, %v939_v57  ;;  %v573_v1 = vmul.f32 %v1130_v22, %v499_v59  ;;  %v981_v2 = vpop.f32.mrf.mxu0  ;;  %v997_v3 = vpop.f32.mrf.mxu1 }
  0xe5   : > { %754 = vst.msk [vmem:[%s1148_s6 + $0x4] sm:$0xf] %vm752_vm3, %v921_v60  ;;  %v926_v4 = vpack.c.bf16 %v598_v62, %v598_v62  ;;  %v942_v5 = vpack.c.bf16 %v614_v63, %v614_v63  ;;  %v560_v6 = vmul.f32 %v981_v2, %v1130_v22  ;;  %v576_v7 = vmul.f32 %v997_v3, %v1130_v22 }
  0xe6   : > { %770 = vst.msk [vmem:[%s1148_s6 + $0x44] sm:$0xf] %vm752_vm3, %v937_v61  ;;  %v596_v8 = vadd.f32 %v1135_v24, %v557_v0  ;;  %v612_v9 = vadd.f32 %v1135_v24, %v573_v1  ;;  %v438_v10 = vpop.f32.mrf.mxu0  ;;  %v502_v11 = vpop.f32.mrf.mxu1 }
  0xe7   : > { %759 = vst.msk [vmem:[%s1148_s6 + $0x18] sm:$0xf] %vm752_vm3, %v926_v4  ;;  %775 = vst.msk [vmem:[%s1148_s6 + $0x58] sm:$0xf] %vm752_vm3, %v942_v5  ;;  %v599_v12 = vadd.f32 %v1135_v24, %v560_v6  ;;  %v615_v13 = vadd.f32 %v1135_v24, %v576_v7  ;;  %v558_v14 = vmul.f32 %v1130_v22, %v438_v10 }
  0xe8   : > { %v574_v15 = vmul.f32 %v1130_v22, %v502_v11  ;;  %v924_v16 = vpack.c.bf16 %v596_v8, %v596_v8  ;;  %v940_v17 = vpack.c.bf16 %v612_v9, %v612_v9  ;;  %v984_v18 = vpop.f32.mrf.mxu0  ;;  %v1000_v19 = vpop.f32.mrf.mxu1 }
  0xe9   : > { %v927_v20 = vpack.c.bf16 %v599_v12, %v599_v12  ;;  %v943_v21 = vpack.c.bf16 %v615_v13, %v615_v13  ;;  %v597_v23 = vadd.f32 %v1135_v24, %v558_v14  ;;  %v563_v26 = vmul.f32 %v984_v18, %v1130_v22 }
  0xea   : > { %v613_v25 = vadd.f32 %v1135_v24, %v574_v15  ;;  %757 = vst.msk [vmem:[%s1148_s6 + $0x10] sm:$0xf] %vm752_vm3, %v924_v16  ;;  %773 = vst.msk [vmem:[%s1148_s6 + $0x50] sm:$0xf] %vm752_vm3, %v940_v17  ;;  %v579_v27 = vmul.f32 %v1000_v19, %v1130_v22  ;;  %v451_v28 = vpop.f32.mrf.mxu0  ;;  %v515_v29 = vpop.f32.mrf.mxu1 }
  0xeb   : > { %760 = vst.msk [vmem:[%s1148_s6 + $0x1c] sm:$0xf] %vm752_vm3, %v927_v20  ;;  %776 = vst.msk [vmem:[%s1148_s6 + $0x5c] sm:$0xf] %vm752_vm3, %v943_v21  ;;  %v925_v30 = vpack.c.bf16 %v597_v23, %v597_v23  ;;  %v561_v32 = vmul.f32 %v1130_v22, %v451_v28  ;;  %v577_v33 = vmul.f32 %v1130_v22, %v515_v29 }
  0xec   : > { %v941_v31 = vpack.c.bf16 %v613_v25, %v613_v25  ;;  %v602_v34 = vadd.f32 %v1135_v24, %v563_v26  ;;  %v618_v35 = vadd.f32 %v1135_v24, %v579_v27  ;;  %v985_v36 = vpop.f32.mrf.mxu0  ;;  %v1001_v37 = vpop.f32.mrf.mxu1 }
  0xed   : > { %758 = vst.msk [vmem:[%s1148_s6 + $0x14] sm:$0xf] %vm752_vm3, %v925_v30  ;;  %v600_v38 = vadd.f32 %v1135_v24, %v561_v32  ;;  %v616_v39 = vadd.f32 %v1135_v24, %v577_v33  ;;  %v564_v40 = vmul.f32 %v985_v36, %v1130_v22  ;;  %v580_v41 = vmul.f32 %v1001_v37, %v1130_v22 }
  0xee   : > { %774 = vst.msk [vmem:[%s1148_s6 + $0x54] sm:$0xf] %vm752_vm3, %v941_v31  ;;  %v930_v42 = vpack.c.bf16 %v602_v34, %v602_v34  ;;  %v946_v43 = vpack.c.bf16 %v618_v35, %v618_v35  ;;  %v454_v44 = vpop.f32.mrf.mxu0  ;;  %v518_v45 = vpop.f32.mrf.mxu1 }
  0xef   : > { %v928_v46 = vpack.c.bf16 %v600_v38, %v600_v38  ;;  %v944_v47 = vpack.c.bf16 %v616_v39, %v616_v39  ;;  %v603_v48 = vadd.f32 %v1135_v24, %v564_v40  ;;  %v619_v49 = vadd.f32 %v1135_v24, %v580_v41 }
  0xf0   : > { %763 = vst.msk [vmem:[%s1148_s6 + $0x28] sm:$0xf] %vm752_vm3, %v930_v42  ;;  %779 = vst.msk [vmem:[%s1148_s6 + $0x68] sm:$0xf] %vm752_vm3, %v946_v43  ;;  %v562_v50 = vmul.f32 %v1130_v22, %v454_v44  ;;  %v578_v51 = vmul.f32 %v1130_v22, %v518_v45  ;;  %v988_v52 = vpop.f32.mrf.mxu0  ;;  %v1004_v53 = vpop.f32.mrf.mxu1 }
  0xf1   : > { %761 = vst.msk [vmem:[%s1148_s6 + $0x20] sm:$0xf] %vm752_vm3, %v928_v46  ;;  %777 = vst.msk [vmem:[%s1148_s6 + $0x60] sm:$0xf] %vm752_vm3, %v944_v47  ;;  %v931_v54 = vpack.c.bf16 %v603_v48, %v603_v48  ;;  %v947_v55 = vpack.c.bf16 %v619_v49, %v619_v49  ;;  %v567_v56 = vmul.f32 %v988_v52, %v1130_v22 }
  0xf2   : > { %v583_v57 = vmul.f32 %v1004_v53, %v1130_v22  ;;  %v601_v58 = vadd.f32 %v1135_v24, %v562_v50  ;;  %v617_v59 = vadd.f32 %v1135_v24, %v578_v51  ;;  %v467_v60 = vpop.f32.mrf.mxu0  ;;  %v531_v61 = vpop.f32.mrf.mxu1 }
  0xf3   : > { %764 = vst.msk [vmem:[%s1148_s6 + $0x2c] sm:$0xf] %vm752_vm3, %v931_v54  ;;  %780 = vst.msk [vmem:[%s1148_s6 + $0x6c] sm:$0xf] %vm752_vm3, %v947_v55  ;;  %v606_v62 = vadd.f32 %v1135_v24, %v567_v56  ;;  %v565_v0 = vmul.f32 %v1130_v22, %v467_v60  ;;  %v581_v1 = vmul.f32 %v1130_v22, %v531_v61 }
  0xf4   : > { %v622_v63 = vadd.f32 %v1135_v24, %v583_v57  ;;  %v929_v2 = vpack.c.bf16 %v601_v58, %v601_v58  ;;  %v945_v3 = vpack.c.bf16 %v617_v59, %v617_v59  ;;  %v989_v4 = vpop.f32.mrf.mxu0  ;;  %v1005_v5 = vpop.f32.mrf.mxu1 }
  0xf5   : > { %v934_v6 = vpack.c.bf16 %v606_v62, %v606_v62  ;;  %v604_v8 = vadd.f32 %v1135_v24, %v565_v0  ;;  %v620_v9 = vadd.f32 %v1135_v24, %v581_v1  ;;  %v568_v10 = vmul.f32 %v989_v4, %v1130_v22 }
  0xf6   : > { %v950_v7 = vpack.c.bf16 %v622_v63, %v622_v63  ;;  %762 = vst.msk [vmem:[%s1148_s6 + $0x24] sm:$0xf] %vm752_vm3, %v929_v2  ;;  %778 = vst.msk [vmem:[%s1148_s6 + $0x64] sm:$0xf] %vm752_vm3, %v945_v3  ;;  %v584_v11 = vmul.f32 %v1005_v5, %v1130_v22  ;;  %v470_v12 = vpop.f32.mrf.mxu0  ;;  %v534_v13 = vpop.f32.mrf.mxu1 }
  0xf7   : > { %767 = vst.msk [vmem:[%s1148_s6 + $0x38] sm:$0xf] %vm752_vm3, %v934_v6  ;;  %v932_v14 = vpack.c.bf16 %v604_v8, %v604_v8  ;;  %v948_v15 = vpack.c.bf16 %v620_v9, %v620_v9  ;;  %v566_v16 = vmul.f32 %v1130_v22, %v470_v12  ;;  %v582_v17 = vmul.f32 %v1130_v22, %v534_v13 }
  0xf8   : > { %783 = vst.msk [vmem:[%s1148_s6 + $0x78] sm:$0xf] %vm752_vm3, %v950_v7  ;;  %v607_v18 = vadd.f32 %v1135_v24, %v568_v10  ;;  %v623_v19 = vadd.f32 %v1135_v24, %v584_v11 }
  0xf9   : > { %765 = vst.msk [vmem:[%s1148_s6 + $0x30] sm:$0xf] %vm752_vm3, %v932_v14  ;;  %781 = vst.msk [vmem:[%s1148_s6 + $0x70] sm:$0xf] %vm752_vm3, %v948_v15  ;;  %v605_v20 = vadd.f32 %v1135_v24, %v566_v16  ;;  %v621_v21 = vadd.f32 %v1135_v24, %v582_v17 }
  0xfa   : > { %v935_v23 = vpack.c.bf16 %v607_v18, %v607_v18  ;;  %v951_v25 = vpack.c.bf16 %v623_v19, %v623_v19 }
  0xfb   : > { %v933_v26 = vpack.c.bf16 %v605_v20, %v605_v20  ;;  %v949_v27 = vpack.c.bf16 %v621_v21, %v621_v21 }
  0xfc   : > { %768 = vst.msk [vmem:[%s1148_s6 + $0x3c] sm:$0xf] %vm752_vm3, %v935_v23  ;;  %784 = vst.msk [vmem:[%s1148_s6 + $0x7c] sm:$0xf] %vm752_vm3, %v951_v25 }
  0xfd   : > { %766 = vst.msk [vmem:[%s1148_s6 + $0x34] sm:$0xf] %vm752_vm3, %v933_v26  ;;  %782 = vst.msk [vmem:[%s1148_s6 + $0x74] sm:$0xf] %vm752_vm3, %v949_v27 }
  0xfe PF: > { %s14_s15 = sadd.s32 1, %s1043_s15  }
  0xff   : > { %p11_p4 = scmp.ge.s32.totalorder %s14_s15, 4  }
 0x101   :  { %13 = sbr.rel (!%p11_p4) target bundleno = 1 (0x1), region = 66 }

</bundles_post_ra>
